<compile_context>
chip_gen: v5e
topology: v5e:2x2
jax: 0.10.0
libtpu: 0.0.40
codegen_flags: <defaults>
</compile_context>

<pallas_src>
import functools

import jax
import jax.numpy as jnp
from jax import lax
from jax.experimental import pallas as pl
from jax.experimental.pallas import tpu as pltpu


def _residual_mlp_kernel(*refs, layer_dims, activation, eps):
    """refs = (x_ref, [gamma, beta, w, b] * n_layers, o_ref)."""
    x_ref, o_ref = refs[0], refs[-1]
    param_refs = refs[1:-1]

    x = x_ref[...].astype(jnp.float32)
    for li, (d_in, d_out) in enumerate(layer_dims):
        gamma = param_refs[4 * li + 0][...]   # (1, d_in)     f32 LayerNorm weight
        beta = param_refs[4 * li + 1][...]    # (1, d_in)     f32 LayerNorm bias
        w = param_refs[4 * li + 2][...]       # (d_in, d_out) bf16 Linear weight (pre-T)
        bias = param_refs[4 * li + 3][...]    # (1, d_out)    f32 Linear bias

        # LayerNorm over the feature dim, f32, single traversal of x.
        mean = jnp.mean(x, axis=-1, keepdims=True)
        mean_sq = jnp.mean(x * x, axis=-1, keepdims=True)
        var = jnp.maximum(mean_sq - mean * mean, 0.0)
        h = (x - mean) * lax.rsqrt(var + eps) * gamma + beta

        # ResidualDense: Linear (bf16 MXU operands, f32 accumulation) -> activation
        # -> + its own (post-norm) input when shapes match.
        y = jnp.dot(h.astype(w.dtype), w, preferred_element_type=jnp.float32) + bias
        if activation is not None:            # module default activation=None -> Identity
            y = activation(y)
        if d_in == d_out:                      # ResidualDense.res_con
            y = y + h

        # Dropout(p=0) between layers -> identity.
        # TODO(synk): dropout p > 0 (training-time RNG mask) not implemented in-kernel.
        x = y

    o_ref[...] = x.astype(o_ref.dtype)


def _pick_block_rows(n_rows, d_in, d_out, io_bytes, cap=4096):
    """Row-tile size: multiple of 8, big enough to amortize the ~0.35us/step
    overhead, small enough for VMEM, and always >= 2 grid steps (v7x megacore)."""
    # Keep the double-buffered in+out tiles under ~16 MiB.
    bytes_per_row = 2 * (d_in + d_out) * io_bytes
    cap = min(cap, max(8, (16 << 20) // max(bytes_per_row, 1) // 8 * 8))
    steps = max(2, pl.cdiv(n_rows, cap))
    block = max(8, ((pl.cdiv(n_rows, steps) + 7) // 8) * 8)
    return block, steps


def residual_mlp(x, layers, *, activation=None, eps=1e-5,
                 io_dtype=jnp.bfloat16, weight_dtype=jnp.bfloat16, block_rows=None):
    """Fused ResidualMLP forward (norm = LayerNorm, dropout = 0).

    x:      [..., D_in]  (leading dims are flattened into rows)
    layers: list of dicts per layer:
              'gamma': (d_in,), 'beta': (d_in,)   -- LayerNorm affine params
              'w': (d_in, d_out)                  -- Linear weight, pre-transposed
              'b': (d_out,)                       -- Linear bias
    Per layer: h = LayerNorm(x); y = h @ w + b; y = act(y); if d_in==d_out: y += h; x = y
    """
    orig_shape, orig_dtype = x.shape, x.dtype
    d_in0 = orig_shape[-1]
    d_out_final = layers[-1]["w"].shape[1]
    layer_dims = tuple((l["w"].shape[0], l["w"].shape[1]) for l in layers)

    x2 = x.reshape(-1, d_in0).astype(io_dtype)
    n_rows = x2.shape[0]
    io_bytes = jnp.dtype(io_dtype).itemsize

    if block_rows is None:
        block_rows, steps = _pick_block_rows(n_rows, d_in0, d_out_final, io_bytes)
    else:
        assert block_rows % 8 == 0, "block_rows must be a multiple of 8"
        steps = pl.cdiv(n_rows, block_rows)
    n_padded = steps * block_rows
    if n_padded != n_rows:
        x2 = jnp.pad(x2, ((0, n_padded - n_rows), (0, 0)))

    def const_spec(shape):
        # Constant index_map: the block never changes across grid steps, so it is
        # DMA'd once and stays resident in VMEM.
        return pl.BlockSpec(shape, lambda *_: (0,) * len(shape))

    flat_params, param_specs = [], []
    for l in layers:
        d_in, d_out = l["w"].shape
        flat_params += [
            l["gamma"].reshape(1, d_in).astype(jnp.float32),
            l["beta"].reshape(1, d_in).astype(jnp.float32),
            l["w"].astype(weight_dtype),
            l["b"].reshape(1, d_out).astype(jnp.float32),
        ]
        param_specs += [const_spec((1, d_in)), const_spec((1, d_in)),
                        const_spec((d_in, d_out)), const_spec((1, d_out))]

    # VMEM budget: double-buffered x/out tiles + (conservatively double-buffered)
    # resident params + margin for in-kernel f32 temporaries.
    max_d = max([d_in0] + [d for dd in layer_dims for d in dd])
    param_bytes = sum(int(p.size) * jnp.dtype(p.dtype).itemsize for p in flat_params)
    vmem_est = (2 * block_rows * (d_in0 + d_out_final) * io_bytes
                + 2 * param_bytes + 4 * block_rows * max_d * 4)
    vmem_limit = int(min(max(2 * vmem_est, 32 << 20), 60 << 20))  # <= 60 MiB: fits v7x

    kernel = functools.partial(
        _residual_mlp_kernel, layer_dims=layer_dims, activation=activation, eps=eps)

    out = pl.pallas_call(
        kernel,
        out_shape=jax.ShapeDtypeStruct((n_padded, d_out_final), io_dtype),
        grid_spec=pltpu.PrefetchScalarGridSpec(
            num_scalar_prefetch=0,
            grid=(steps,),
            in_specs=[pl.BlockSpec((block_rows, d_in0), lambda i: (i, 0))] + param_specs,
            out_specs=pl.BlockSpec((block_rows, d_out_final), lambda i: (i, 0)),
        ),
        compiler_params=pltpu.CompilerParams(
            dimension_semantics=("parallel",),
            vmem_limit_bytes=vmem_limit),
    )(x2, *flat_params)

    out = out[:n_rows].astype(orig_dtype)
    return out.reshape(orig_shape[:-1] + (d_out_final,))


def _reference(x, layers, *, activation=None, eps=1e-5):
    """Pure-JAX f32 reference matching ResidualMLP.forward (norm=LayerNorm, dropout=0)."""
    x = x.astype(jnp.float32)
    for l in layers:
        d_in, d_out = l["w"].shape
        mu = x.mean(-1, keepdims=True)
        var = ((x - mu) ** 2).mean(-1, keepdims=True)
        h = (x - mu) / jnp.sqrt(var + eps) * l["gamma"] + l["beta"]
        y = h @ l["w"] + l["b"]
        if activation is not None:
            y = activation(y)
        if d_in == d_out:
            y = y + h
        x = y
    return x


if __name__ == "__main__":
    # Equivalent module config:
    #   ResidualMLP(layer_sizes=[128, 128, 128], input_size=128,
    #               activation=None, norm=torch.nn.LayerNorm, dropout=0)
    # 128 features keeps every matmul operand / store lane-dense on TPU.
    B, S, D = 2, 8, 128
    layer_sizes = [D, D, D]

    key = jax.random.PRNGKey(0)
    keys = jax.random.split(key, 2 * len(layer_sizes) + 1)

    layers = []
    d_in = D
    for i, d_out in enumerate(layer_sizes):
        scale = 1.0 / jnp.sqrt(jnp.float32(d_in))  # ~torch.nn.Linear default scale
        layers.append({
            "gamma": jnp.ones((d_in,), jnp.float32),
            "beta": jnp.zeros((d_in,), jnp.float32),
            "w": scale * jax.random.normal(keys[2 * i], (d_in, d_out), jnp.float32),
            "b": scale * jax.random.normal(keys[2 * i + 1], (d_out,), jnp.float32),
        })
        d_in = d_out

    x = jax.random.normal(keys[-1], (B, S, D), jnp.float32)

    out = residual_mlp(x, layers, activation=None)
    out = jax.block_until_ready(out)

    ref = _reference(x, layers, activation=None)
    assert out.shape == (B, S, layer_sizes[-1])
    # Tolerance bounds bf16 input/output streaming + bf16 MXU operand rounding
    # (f32 accumulation) compounded over 3 LayerNorm+Linear+residual layers.
    assert jnp.allclose(out, ref, atol=5e-2, rtol=5e-2), "mismatch vs reference"
    print("KERNEL_OK")
</pallas_src>

<mosaic_0001>
module attributes {stable_mosaic.version = 11 : i64} {
  func.func @_residual_mlp_kernel(%arg0: i32, %arg1: memref<8x128xbf16, #tpu.memory_space<vmem>>, %arg2: memref<1x128xf32, #tpu.memory_space<vmem>>, %arg3: memref<1x128xf32, #tpu.memory_space<vmem>>, %arg4: memref<128x128xbf16, #tpu.memory_space<vmem>>, %arg5: memref<1x128xf32, #tpu.memory_space<vmem>>, %arg6: memref<1x128xf32, #tpu.memory_space<vmem>>, %arg7: memref<1x128xf32, #tpu.memory_space<vmem>>, %arg8: memref<128x128xbf16, #tpu.memory_space<vmem>>, %arg9: memref<1x128xf32, #tpu.memory_space<vmem>>, %arg10: memref<1x128xf32, #tpu.memory_space<vmem>>, %arg11: memref<1x128xf32, #tpu.memory_space<vmem>>, %arg12: memref<128x128xbf16, #tpu.memory_space<vmem>>, %arg13: memref<1x128xf32, #tpu.memory_space<vmem>>, %arg14: memref<8x128xbf16, #tpu.memory_space<vmem>>) attributes {dimension_semantics = [#tpu.dimension_semantics<parallel>], iteration_bounds = array<i64: 2>, scalar_prefetch = 0 : i64, scratch_operands = 0 : i64, tpu.core_type = #tpu.core_type<tc>, window_params = [{transform_indices = @transform_0, window_bounds = array<i64: 8, 128>}, {pipeline_mode = #tpu.pipeline_mode<synchronous>, transform_indices = @transform_1, window_bounds = array<i64: 1, 128>}, {pipeline_mode = #tpu.pipeline_mode<synchronous>, transform_indices = @transform_2, window_bounds = array<i64: 1, 128>}, {pipeline_mode = #tpu.pipeline_mode<synchronous>, transform_indices = @transform_3, window_bounds = array<i64: 128, 128>}, {pipeline_mode = #tpu.pipeline_mode<synchronous>, transform_indices = @transform_4, window_bounds = array<i64: 1, 128>}, {pipeline_mode = #tpu.pipeline_mode<synchronous>, transform_indices = @transform_5, window_bounds = array<i64: 1, 128>}, {pipeline_mode = #tpu.pipeline_mode<synchronous>, transform_indices = @transform_6, window_bounds = array<i64: 1, 128>}, {pipeline_mode = #tpu.pipeline_mode<synchronous>, transform_indices = @transform_7, window_bounds = array<i64: 128, 128>}, {pipeline_mode = #tpu.pipeline_mode<synchronous>, transform_indices = @transform_8, window_bounds = array<i64: 1, 128>}, {pipeline_mode = #tpu.pipeline_mode<synchronous>, transform_indices = @transform_9, window_bounds = array<i64: 1, 128>}, {pipeline_mode = #tpu.pipeline_mode<synchronous>, transform_indices = @transform_10, window_bounds = array<i64: 1, 128>}, {pipeline_mode = #tpu.pipeline_mode<synchronous>, transform_indices = @transform_11, window_bounds = array<i64: 128, 128>}, {pipeline_mode = #tpu.pipeline_mode<synchronous>, transform_indices = @transform_12, window_bounds = array<i64: 1, 128>}, {transform_indices = @transform_13, window_bounds = array<i64: 8, 128>}]} {
    %c0 = arith.constant 0 : index
    %c0_0 = arith.constant 0 : index
    %0 = vector.load %arg1[%c0, %c0_0] : memref<8x128xbf16, #tpu.memory_space<vmem>>, vector<8x128xbf16>
    %1 = arith.extf %0 : vector<8x128xbf16> to vector<8x128xf32>
    %c0_1 = arith.constant 0 : index
    %c0_2 = arith.constant 0 : index
    %2 = vector.load %arg2[%c0_1, %c0_2] : memref<1x128xf32, #tpu.memory_space<vmem>>, vector<1x128xf32>
    %c0_3 = arith.constant 0 : index
    %c0_4 = arith.constant 0 : index
    %3 = vector.load %arg3[%c0_3, %c0_4] : memref<1x128xf32, #tpu.memory_space<vmem>>, vector<1x128xf32>
    %c0_5 = arith.constant 0 : index
    %c0_6 = arith.constant 0 : index
    %4 = vector.load %arg4[%c0_5, %c0_6] : memref<128x128xbf16, #tpu.memory_space<vmem>>, vector<128x128xbf16>
    %c0_7 = arith.constant 0 : index
    %c0_8 = arith.constant 0 : index
    %5 = vector.load %arg5[%c0_7, %c0_8] : memref<1x128xf32, #tpu.memory_space<vmem>>, vector<1x128xf32>
    %cst = arith.constant dense<0.000000e+00> : vector<8xf32>
    %6 = vector.multi_reduction <add>, %1, %cst [1] : vector<8x128xf32> to vector<8xf32>
    %7 = vector.shape_cast %6 : vector<8xf32> to vector<8x1xf32>
    %cst_9 = arith.constant 1.280000e+02 : f32
    %8 = vector.broadcast %cst_9 : f32 to vector<8x1xf32>
    %9 = arith.divf %7, %8 : vector<8x1xf32>
    %10 = arith.mulf %1, %1 : vector<8x128xf32>
    %cst_10 = arith.constant dense<0.000000e+00> : vector<8xf32>
    %11 = vector.multi_reduction <add>, %10, %cst_10 [1] : vector<8x128xf32> to vector<8xf32>
    %12 = vector.shape_cast %11 : vector<8xf32> to vector<8x1xf32>
    %cst_11 = arith.constant 1.280000e+02 : f32
    %13 = vector.broadcast %cst_11 : f32 to vector<8x1xf32>
    %14 = arith.divf %12, %13 : vector<8x1xf32>
    %15 = arith.mulf %9, %9 : vector<8x1xf32>
    %16 = arith.subf %14, %15 : vector<8x1xf32>
    %cst_12 = arith.constant 0.000000e+00 : f32
    %17 = vector.broadcast %cst_12 : f32 to vector<8x1xf32>
    %18 = arith.maximumf %16, %17 : vector<8x1xf32>
    %19 = vector.broadcast %9 : vector<8x1xf32> to vector<8x128xf32>
    %20 = arith.subf %1, %19 : vector<8x128xf32>
    %cst_13 = arith.constant 9.99999974E-6 : f32
    %21 = vector.broadcast %cst_13 : f32 to vector<8x1xf32>
    %22 = arith.addf %18, %21 : vector<8x1xf32>
    %23 = math.rsqrt %22 : vector<8x1xf32>
    %24 = vector.broadcast %23 : vector<8x1xf32> to vector<8x128xf32>
    %25 = arith.mulf %20, %24 : vector<8x128xf32>
    %26 = vector.broadcast %2 : vector<1x128xf32> to vector<8x128xf32>
    %27 = arith.mulf %25, %26 : vector<8x128xf32>
    %28 = vector.broadcast %3 : vector<1x128xf32> to vector<8x128xf32>
    %29 = arith.addf %27, %28 : vector<8x128xf32>
    %30 = arith.truncf %29 : vector<8x128xf32> to vector<8x128xbf16>
    %cst_14 = arith.constant dense<0.000000e+00> : vector<8x128xf32>
    %31 = tpu.matmul %30, %4, %cst_14 {dimension_numbers = #tpu.dot_dimension_numbers<[1], [0], [0], [1], [0, 0, 1, 1], [], []>} : vector<8x128xbf16>, vector<128x128xbf16>, vector<8x128xf32> -> vector<8x128xf32>
    %32 = vector.broadcast %5 : vector<1x128xf32> to vector<8x128xf32>
    %33 = arith.addf %31, %32 : vector<8x128xf32>
    %34 = arith.addf %33, %29 : vector<8x128xf32>
    %c0_15 = arith.constant 0 : index
    %c0_16 = arith.constant 0 : index
    %35 = vector.load %arg6[%c0_15, %c0_16] : memref<1x128xf32, #tpu.memory_space<vmem>>, vector<1x128xf32>
    %c0_17 = arith.constant 0 : index
    %c0_18 = arith.constant 0 : index
    %36 = vector.load %arg7[%c0_17, %c0_18] : memref<1x128xf32, #tpu.memory_space<vmem>>, vector<1x128xf32>
    %c0_19 = arith.constant 0 : index
    %c0_20 = arith.constant 0 : index
    %37 = vector.load %arg8[%c0_19, %c0_20] : memref<128x128xbf16, #tpu.memory_space<vmem>>, vector<128x128xbf16>
    %c0_21 = arith.constant 0 : index
    %c0_22 = arith.constant 0 : index
    %38 = vector.load %arg9[%c0_21, %c0_22] : memref<1x128xf32, #tpu.memory_space<vmem>>, vector<1x128xf32>
    %cst_23 = arith.constant dense<0.000000e+00> : vector<8xf32>
    %39 = vector.multi_reduction <add>, %34, %cst_23 [1] : vector<8x128xf32> to vector<8xf32>
    %40 = vector.shape_cast %39 : vector<8xf32> to vector<8x1xf32>
    %cst_24 = arith.constant 1.280000e+02 : f32
    %41 = vector.broadcast %cst_24 : f32 to vector<8x1xf32>
    %42 = arith.divf %40, %41 : vector<8x1xf32>
    %43 = arith.mulf %34, %34 : vector<8x128xf32>
    %cst_25 = arith.constant dense<0.000000e+00> : vector<8xf32>
    %44 = vector.multi_reduction <add>, %43, %cst_25 [1] : vector<8x128xf32> to vector<8xf32>
    %45 = vector.shape_cast %44 : vector<8xf32> to vector<8x1xf32>
    %cst_26 = arith.constant 1.280000e+02 : f32
    %46 = vector.broadcast %cst_26 : f32 to vector<8x1xf32>
    %47 = arith.divf %45, %46 : vector<8x1xf32>
    %48 = arith.mulf %42, %42 : vector<8x1xf32>
    %49 = arith.subf %47, %48 : vector<8x1xf32>
    %cst_27 = arith.constant 0.000000e+00 : f32
    %50 = vector.broadcast %cst_27 : f32 to vector<8x1xf32>
    %51 = arith.maximumf %49, %50 : vector<8x1xf32>
    %52 = vector.broadcast %42 : vector<8x1xf32> to vector<8x128xf32>
    %53 = arith.subf %34, %52 : vector<8x128xf32>
    %cst_28 = arith.constant 9.99999974E-6 : f32
    %54 = vector.broadcast %cst_28 : f32 to vector<8x1xf32>
    %55 = arith.addf %51, %54 : vector<8x1xf32>
    %56 = math.rsqrt %55 : vector<8x1xf32>
    %57 = vector.broadcast %56 : vector<8x1xf32> to vector<8x128xf32>
    %58 = arith.mulf %53, %57 : vector<8x128xf32>
    %59 = vector.broadcast %35 : vector<1x128xf32> to vector<8x128xf32>
    %60 = arith.mulf %58, %59 : vector<8x128xf32>
    %61 = vector.broadcast %36 : vector<1x128xf32> to vector<8x128xf32>
    %62 = arith.addf %60, %61 : vector<8x128xf32>
    %63 = arith.truncf %62 : vector<8x128xf32> to vector<8x128xbf16>
    %cst_29 = arith.constant dense<0.000000e+00> : vector<8x128xf32>
    %64 = tpu.matmul %63, %37, %cst_29 {dimension_numbers = #tpu.dot_dimension_numbers<[1], [0], [0], [1], [0, 0, 1, 1], [], []>} : vector<8x128xbf16>, vector<128x128xbf16>, vector<8x128xf32> -> vector<8x128xf32>
    %65 = vector.broadcast %38 : vector<1x128xf32> to vector<8x128xf32>
    %66 = arith.addf %64, %65 : vector<8x128xf32>
    %67 = arith.addf %66, %62 : vector<8x128xf32>
    %c0_30 = arith.constant 0 : index
    %c0_31 = arith.constant 0 : index
    %68 = vector.load %arg10[%c0_30, %c0_31] : memref<1x128xf32, #tpu.memory_space<vmem>>, vector<1x128xf32>
    %c0_32 = arith.constant 0 : index
    %c0_33 = arith.constant 0 : index
    %69 = vector.load %arg11[%c0_32, %c0_33] : memref<1x128xf32, #tpu.memory_space<vmem>>, vector<1x128xf32>
    %c0_34 = arith.constant 0 : index
    %c0_35 = arith.constant 0 : index
    %70 = vector.load %arg12[%c0_34, %c0_35] : memref<128x128xbf16, #tpu.memory_space<vmem>>, vector<128x128xbf16>
    %c0_36 = arith.constant 0 : index
    %c0_37 = arith.constant 0 : index
    %71 = vector.load %arg13[%c0_36, %c0_37] : memref<1x128xf32, #tpu.memory_space<vmem>>, vector<1x128xf32>
    %cst_38 = arith.constant dense<0.000000e+00> : vector<8xf32>
    %72 = vector.multi_reduction <add>, %67, %cst_38 [1] : vector<8x128xf32> to vector<8xf32>
    %73 = vector.shape_cast %72 : vector<8xf32> to vector<8x1xf32>
    %cst_39 = arith.constant 1.280000e+02 : f32
    %74 = vector.broadcast %cst_39 : f32 to vector<8x1xf32>
    %75 = arith.divf %73, %74 : vector<8x1xf32>
    %76 = arith.mulf %67, %67 : vector<8x128xf32>
    %cst_40 = arith.constant dense<0.000000e+00> : vector<8xf32>
    %77 = vector.multi_reduction <add>, %76, %cst_40 [1] : vector<8x128xf32> to vector<8xf32>
    %78 = vector.shape_cast %77 : vector<8xf32> to vector<8x1xf32>
    %cst_41 = arith.constant 1.280000e+02 : f32
    %79 = vector.broadcast %cst_41 : f32 to vector<8x1xf32>
    %80 = arith.divf %78, %79 : vector<8x1xf32>
    %81 = arith.mulf %75, %75 : vector<8x1xf32>
    %82 = arith.subf %80, %81 : vector<8x1xf32>
    %cst_42 = arith.constant 0.000000e+00 : f32
    %83 = vector.broadcast %cst_42 : f32 to vector<8x1xf32>
    %84 = arith.maximumf %82, %83 : vector<8x1xf32>
    %85 = vector.broadcast %75 : vector<8x1xf32> to vector<8x128xf32>
    %86 = arith.subf %67, %85 : vector<8x128xf32>
    %cst_43 = arith.constant 9.99999974E-6 : f32
    %87 = vector.broadcast %cst_43 : f32 to vector<8x1xf32>
    %88 = arith.addf %84, %87 : vector<8x1xf32>
    %89 = math.rsqrt %88 : vector<8x1xf32>
    %90 = vector.broadcast %89 : vector<8x1xf32> to vector<8x128xf32>
    %91 = arith.mulf %86, %90 : vector<8x128xf32>
    %92 = vector.broadcast %68 : vector<1x128xf32> to vector<8x128xf32>
    %93 = arith.mulf %91, %92 : vector<8x128xf32>
    %94 = vector.broadcast %69 : vector<1x128xf32> to vector<8x128xf32>
    %95 = arith.addf %93, %94 : vector<8x128xf32>
    %96 = arith.truncf %95 : vector<8x128xf32> to vector<8x128xbf16>
    %cst_44 = arith.constant dense<0.000000e+00> : vector<8x128xf32>
    %97 = tpu.matmul %96, %70, %cst_44 {dimension_numbers = #tpu.dot_dimension_numbers<[1], [0], [0], [1], [0, 0, 1, 1], [], []>} : vector<8x128xbf16>, vector<128x128xbf16>, vector<8x128xf32> -> vector<8x128xf32>
    %98 = vector.broadcast %71 : vector<1x128xf32> to vector<8x128xf32>
    %99 = arith.addf %97, %98 : vector<8x128xf32>
    %100 = arith.addf %99, %95 : vector<8x128xf32>
    %101 = arith.truncf %100 : vector<8x128xf32> to vector<8x128xbf16>
    %c0_45 = arith.constant 0 : index
    %c0_46 = arith.constant 0 : index
    %102 = vector.load %arg14[%c0_45, %c0_46] : memref<8x128xbf16, #tpu.memory_space<vmem>>, vector<8x128xbf16>
    tpu.vector_store %arg14[%c0_45, %c0_46], %101 {strides = array<i32>} : memref<8x128xbf16, #tpu.memory_space<vmem>>, vector<8x128xbf16>,
    return
  }
  func.func @transform_0(%arg0: i32) -> (i32, i32) {
    %c0_i32 = arith.constant 0 : i32
    %c0_i32_0 = arith.constant 0 : i32
    return %arg0, %c0_i32 : i32, i32
  }
  func.func @transform_1(%arg0: i32) -> (i32, i32) {
    %c0_i32 = arith.constant 0 : i32
    %c0_i32_0 = arith.constant 0 : i32
    %c0_i32_1 = arith.constant 0 : i32
    return %c0_i32, %c0_i32_0 : i32, i32
  }
  func.func @transform_2(%arg0: i32) -> (i32, i32) {
    %c0_i32 = arith.constant 0 : i32
    %c0_i32_0 = arith.constant 0 : i32
    %c0_i32_1 = arith.constant 0 : i32
    return %c0_i32, %c0_i32_0 : i32, i32
  }
  func.func @transform_3(%arg0: i32) -> (i32, i32) {
    %c0_i32 = arith.constant 0 : i32
    %c0_i32_0 = arith.constant 0 : i32
    %c0_i32_1 = arith.constant 0 : i32
    return %c0_i32, %c0_i32_0 : i32, i32
  }
  func.func @transform_4(%arg0: i32) -> (i32, i32) {
    %c0_i32 = arith.constant 0 : i32
    %c0_i32_0 = arith.constant 0 : i32
    %c0_i32_1 = arith.constant 0 : i32
    return %c0_i32, %c0_i32_0 : i32, i32
  }
  func.func @transform_5(%arg0: i32) -> (i32, i32) {
    %c0_i32 = arith.constant 0 : i32
    %c0_i32_0 = arith.constant 0 : i32
    %c0_i32_1 = arith.constant 0 : i32
    return %c0_i32, %c0_i32_0 : i32, i32
  }
  func.func @transform_6(%arg0: i32) -> (i32, i32) {
    %c0_i32 = arith.constant 0 : i32
    %c0_i32_0 = arith.constant 0 : i32
    %c0_i32_1 = arith.constant 0 : i32
    return %c0_i32, %c0_i32_0 : i32, i32
  }
  func.func @transform_7(%arg0: i32) -> (i32, i32) {
    %c0_i32 = arith.constant 0 : i32
    %c0_i32_0 = arith.constant 0 : i32
    %c0_i32_1 = arith.constant 0 : i32
    return %c0_i32, %c0_i32_0 : i32, i32
  }
  func.func @transform_8(%arg0: i32) -> (i32, i32) {
    %c0_i32 = arith.constant 0 : i32
    %c0_i32_0 = arith.constant 0 : i32
    %c0_i32_1 = arith.constant 0 : i32
    return %c0_i32, %c0_i32_0 : i32, i32
  }
  func.func @transform_9(%arg0: i32) -> (i32, i32) {
    %c0_i32 = arith.constant 0 : i32
    %c0_i32_0 = arith.constant 0 : i32
    %c0_i32_1 = arith.constant 0 : i32
    return %c0_i32, %c0_i32_0 : i32, i32
  }
  func.func @transform_10(%arg0: i32) -> (i32, i32) {
    %c0_i32 = arith.constant 0 : i32
    %c0_i32_0 = arith.constant 0 : i32
    %c0_i32_1 = arith.constant 0 : i32
    return %c0_i32, %c0_i32_0 : i32, i32
  }
  func.func @transform_11(%arg0: i32) -> (i32, i32) {
    %c0_i32 = arith.constant 0 : i32
    %c0_i32_0 = arith.constant 0 : i32
    %c0_i32_1 = arith.constant 0 : i32
    return %c0_i32, %c0_i32_0 : i32, i32
  }
  func.func @transform_12(%arg0: i32) -> (i32, i32) {
    %c0_i32 = arith.constant 0 : i32
    %c0_i32_0 = arith.constant 0 : i32
    %c0_i32_1 = arith.constant 0 : i32
    return %c0_i32, %c0_i32_0 : i32, i32
  }
  func.func @transform_13(%arg0: i32) -> (i32, i32) {
    %c0_i32 = arith.constant 0 : i32
    %c0_i32_0 = arith.constant 0 : i32
    return %arg0, %c0_i32 : i32, i32
  }
}

</mosaic_0001>

<bundles_post_ra>
// kernel: tpu_custom_call.1
= control target key start
LH: loop header
LB: loop body
LE: loop exit
PB: predicated region body
PF: predicated region fallthrough
CT: control target
= control target key end

     0   :  { %s1758_s0 = inlined_call_operand.hbm [shape: bf16[16,128], index: 0, kind: input, shape index: {}]   ;;  %s1759_s1 = inlined_call_operand.hbm [shape: f32[1,128], index: 1, kind: input, shape index: {}]   ;;  %s1760_s2 = inlined_call_operand.vmem [shape: f32[1,128], index: 2, kind: input, shape index: {}]   ;;  %s1761_s3 = inlined_call_operand.hbm [shape: bf16[128,128], index: 3, kind: input, shape index: {}]   ;;  %s1762_s4 = inlined_call_operand.vmem [shape: f32[1,128], index: 4, kind: input, shape index: {}]   ;;  %s1763_s5 = inlined_call_operand.vmem [shape: f32[1,128], index: 5, kind: input, shape index: {}]   ;;  %s1764_s6 = inlined_call_operand.vmem [shape: f32[1,128], index: 6, kind: input, shape index: {}]   ;;  %s1765_s7 = inlined_call_operand.hbm [shape: bf16[128,128], index: 7, kind: input, shape index: {}]   ;;  %s1766_s8 = inlined_call_operand.vmem [shape: f32[1,128], index: 8, kind: input, shape index: {}]   ;;  %s1767_s9 = inlined_call_operand.vmem [shape: f32[1,128], index: 9, kind: input, shape index: {}]   ;;  %s1768_s10 = inlined_call_operand.vmem [shape: f32[1,128], index: 10, kind: input, shape index: {}]   ;;  %s1769_s11 = inlined_call_operand.hbm [shape: bf16[128,128], index: 11, kind: input, shape index: {}]   ;;  %s1770_s12 = inlined_call_operand.vmem [shape: f32[1,128], index: 12, kind: input, shape index: {}]   ;;  %s1771_s13 = inlined_call_operand.hbm [shape: bf16[16,128], index: 13, kind: output, shape index: {}]  }
   0x1   :  { %1776 = sst [smem:[#allocation20_spill]] %s1759_s1 }
   0x2   :  { %1777 = sst [smem:[#allocation21_spill]] %s1761_s3 }
   0x3   :  { %1778 = sst [smem:[#allocation22_spill]] %s1765_s7 }
   0x4   :  { %1779 = sst [smem:[#allocation23_spill]] %s1769_s11 }
   0x5   :  { %18 = vsyncpa [#allocation3], 0 }
   0x6   :  { %20 = vsyncpa [#allocation3 + $0x1], 0 }
   0x7   :  { %21 = vsyncpa [#allocation6], 0 }
   0x8   :  { %22 = vsyncpa [#allocation9], 0 }
   0x9   :  { %23 = vsyncpa [#allocation4], 0 }
   0xa   :  { %25 = vsyncpa [#allocation4 + $0x1], 0  ;;  %s1555_s25 = smov 0   ;;  %s1557_s26 = smov 0  }
   0xb   :  { %s1559_s27 = smov 0   ;;  %s1561_s28 = smov 0  }
   0xc LB: > { %1780 = sst [smem:[#allocation16_spill]] %s1472_s27  ;;  %s1579_s15 = sadd.s32 4294967295, %s1476_s28   ;;  %s1476_s28 = sphi %s1561_s28, %s1797_s28   ;;  %s1472_s27 = sphi %s1559_s27, %s1799_s27   ;;  %s1468_s26 = sphi %s1557_s26, %s1801_s26   ;;  %s1464_s25 = sphi %s1555_s25, %s1800_s25  }
   0xd   : > { %s1781_s1 = sld [smem:[#allocation20_spill]]  ;;  %p1006_p0 = scmp.ge.s32.totalorder %s1476_s28, 1 }
   0xe   : > { %p52_p1 = scmp.eq.s32.totalorder %s1579_s15, 0  ;;  %p340_p2 = scmp.lt.s32.totalorder %s1476_s28, 3 }
   0xf   : > { %s1478_s17 = smov [#allocation5]   ;;  %s1783_s7 = sld [smem:[#allocation22_spill]] }
  0x10   : > { %p1584_p3 = pnand %p1006_p0, %p340_p2  ;;  %s354_s18 = sshll.u32 %s1478_s17, 4  ;;  %s355_s18 = int_to_ptr.vmem [resolvable:$true] %s354_s18 }
  0x11   : > { %s1785_s3 = sld [smem:[#allocation21_spill]]  ;;  %s1479_s30 = smov [#allocation8]  }
  0x12   : > { %p1165_p5 = pneg %p1584_p3  ;;  %s391_s17 = sshll.u32 %s1479_s30, 4  ;;  %s392_s17 = int_to_ptr.vmem [resolvable:$true] %s391_s17 }
  0x13   : > { %s352_s14 = sshll.u32 %s1781_s1, 4  ;;  %s1480_s19 = smov 64   ;;  %s353_s14 = int_to_ptr.hbm [resolvable:$true] %s352_s14 }
  0x14   : > { %p1596_p6 = pnand %p1165_p5, %p52_p1  ;;  %s1481_s20 = smov 4  }
  0x15   : > { %s389_s21 = sshll.u32 %s1783_s7, 4  ;;  %s1786_s11 = sld [smem:[#allocation23_spill]]  ;;  %s390_s21 = int_to_ptr.hbm [resolvable:$true] %s389_s21 }
  0x16   : > { %1168 = dma.hbm_to_vmem [thread:$0]  (!%p1596_p6), %s353_s14, 16, %s355_s18, [#allocation6]  }
  0x17   : > { %s366_s29 = sshll.u32 %s1785_s3, 4  ;;  %s1482_s24 = smov [#allocation7]   ;;  %s367_s29 = int_to_ptr.hbm [resolvable:$true] %s366_s29 }
  0x18   : > { %1174 = dma.hbm_to_vmem [thread:$0]  (!%p1596_p6), %s390_s21, 1024, %s392_s17, [#allocation9], %s1480_s19, %s1480_s19, %s1481_s20  }
  0x19   : > { %s368_s14 = sshll.u32 %s1482_s24, 4  ;;  %s1483_s18 = smov [#allocation10]   ;;  %s369_s14 = int_to_ptr.vmem [resolvable:$true] %s368_s14 }
  0x1a   : > { %1171 = dma.hbm_to_vmem [thread:$0]  (!%p1596_p6), %s367_s29, 1024, %s369_s14, [#allocation6], %s1480_s19, %s1480_s19, %s1481_s20  }
  0x1b   : > { %s412_s23 = sshll.u32 %s1786_s11, 4  ;;  %s414_s21 = sshll.u32 %s1483_s18, 4  ;;  %s413_s23 = int_to_ptr.hbm [resolvable:$true] %s412_s23  ;;  %s415_s21 = int_to_ptr.vmem [resolvable:$true] %s414_s21 }
  0x1c   : > { %1177 = dma.hbm_to_vmem [thread:$0]  (!%p1596_p6), %s413_s23, 1024, %s415_s21, [#allocation9], %s1480_s19, %s1480_s19, %s1481_s20  }
  0x1d   : > { %s1005_s1 = sadd.s32 4294967294, %s1476_s28   ;;  %s1616_s7 = sadd.s32 1, %s1476_s28  }
  0x1e   : > { %1787 = sst [smem:[#allocation17_spill]] %s1616_s7  ;;  %s35_s30 = ssub.s32 %s1476_s28, %s1616_s7 }
  0x1f   : > { %s38_s17 = sadd.s32 1, %s1472_s27  ;;  %p36_p7 = scmp.eq.s32.totalorder %s35_s30, 0 }
  0x20   : > { %p45_p8 = scmp.ne.s32.totalorder %s1472_s27, %s1468_s26  ;;  %p46_p9 = scmp.eq.s32.totalorder %s1476_s28, 0 }
  0x21   : > { %p51_p10 = scmp.ne.s32.totalorder %s1468_s26, %s1464_s25  ;;  %p327_p13 = scmp.eq.s32.totalorder %s1579_s15, 1 }
  0x22   : > { %s1627_s29 = scalar_select %p36_p7, %s1472_s27, %s38_s17  }
  0x23   : > { %p1629_p11 = por %p46_p9, %p45_p8  ;;  %p1635_p12 = por %p52_p1, %p51_p10 }
  0x24   : > { %1788 = sst [smem:[#allocation18_spill]] %s1627_s29  ;;  %p333_p0 = scmp.eq.s32.totalorder %s1005_s1, 1 }
  0x25   : > { %p1190_p2 = scmp.lt.s32.totalorder %s1476_s28, 2  ;;  %s431_s19 = sand.u32 1, %s1472_s27  }
  0x26   : > { %p1642_p5 = por %p327_p13, %p45_p8  ;;  %p1646_p6 = por %p333_p0, %p51_p10 }
  0x27   : > { %s1012_s14 = sshll.u32 %s431_s19, 2  ;;  %s1013_s18 = sshll.u32 %s1476_s28, 2 }
  0x28   : > { %s1792_s23 = scalar_select %p1646_p6, 1, 0 }
  0x29   : > { %s439_s17 = scalar_lea.hbm %s1758_s0, %s1013_s18  ;;  %s435_s3 = scalar_lea.vmem [#allocation2], %s1012_s14 }
  0x2a   : > { %1793 = sst [smem:[#allocation19_spill]] %s1792_s23  ;;  %s443_s11 = sshll.u32 %s435_s3, 4  ;;  %s444_s11 = int_to_ptr.vmem [resolvable:$true] %s443_s11 }
  0x2b   : > { %s441_s29 = sshll.u32 %s439_s17, 4  ;;  %p1656_p7 = pnand %p1190_p2, %p1629_p11  ;;  %s442_s29 = int_to_ptr.hbm [resolvable:$true] %s441_s29 }
  0x2c   : > { %s432_s27 = scalar_lea.sflag [#allocation3], %s431_s19  ;;  %s1372_s7 = sshra.s32 %s442_s29, 4  ;;  %s1373_s7 = int_to_ptr.hbm [resolvable:$true] %s1372_s7 }
  0x2d   : > { %s1374_s23 = scalar_lea.hbm %s1373_s7, 4  ;;  %p1376_p9 = pneg %p1656_p7 }
  0x2e   : > { %p1375_p8 = scmp.ne.s32.totalorder %s1373_s7, %s1374_s23  ;;  %s1379_s18 = scalar_lea.hbm %s1758_s0, 8 }
  0x2f   : > { %p1380_p11 = scmp.lt.s32.totalorder %s1373_s7, %s1758_s0  ;;  %p1381_p0 = scmp.lt.s32.totalorder %s1379_s18, %s1374_s23 }
  0x30   : > { %p1377_p10 = pnand %p1376_p9, %p1375_p8 }
  0x31   : > { %p1382_p2 = por %p1381_p0, %p1380_p11 }
  0x32   : > { %p1378_p13 = pneg %p1377_p10 }
  0x34   : > { %p1383_p4 = pnand %p1382_p2, %p1378_p13 }
  0x36   : > { %1386 = shalt.err (!%p1383_p4)
}
  0x37   : > { %1181 = dma.hbm_to_vmem [thread:$0]  (!%p1656_p7), %s442_s29, 64, %s444_s11, %s432_s27  }
  0x38   : > { %452 = sbr.rel (%p1584_p3) target bundleno = 945 (0x3b1), region = 72  ;;  %s1673_s19 = sand.u32 (!%p1584_p3), 1, %s1468_s26  }
  0x39   : > { %s1015_s30 = sshll.u32 (!%p1584_p3), %s1673_s19, 2  ;;  %s455_s17 = scalar_lea.sflag (!%p1584_p3), [#allocation3], %s1673_s19 }
  0x3a   : > { %s458_s7 = scalar_lea.vmem (!%p1584_p3), [#allocation2], %s1015_s30 }
  0x3d   : > { %1447 = dma.done.wait (%p1635_p12), %s455_s17, 64  }
  0x3e   : > { %1449 = vsyncadd (%p1635_p12), %s455_s17, 4294967232 }
  0x3f   : > { %1451 = dma.done.wait (%p52_p1), [#allocation6], 1040  }
  0x40   : > { %1453 = vsyncadd (%p52_p1), [#allocation6], 4294966256 }
  0x41   : > { %1455 = dma.done.wait (%p52_p1), [#allocation9], 2048  }
  0x42   : > { %1457 = vsyncadd (%p52_p1), [#allocation9], 4294965248  ;;  %v522_v0 = vld [vmem:[%s458_s7] sm:$0xf]  ;;  %v1484_v3 = vmov 128.0   ;;  %v1126_v8 = vld [vmem:[#allocation7 + $0x28] sm:$0xff] }
  0x43   : > { %v523_v1 = vunpack.c.l.bf16 %v522_v0  ;;  %1244 = vrcp.f32 %v1484_v3  ;;  %v1128_v4 = vld [vmem:[#allocation7 + $0x38] sm:$0xff]  ;;  %v1127_v5 = vld [vmem:[#allocation7 + $0x30] sm:$0xff]  ;;  %v1125_v10 = vld [vmem:[#allocation7 + $0x20] sm:$0xff]  ;;  %s1118_s11 = sshll.u32 %s1579_s15, 2  ;;  %s521_s1 = scalar_lea.vmem [#allocation11], %s1015_s30 }
  0x44   : > { %633 = vmatpush.bf16.msra.mxu0 %v1128_v4  ;;  %v1124_v12 = vld [vmem:[#allocation7 + $0x18] sm:$0xff]  ;;  %v1123_v14 = vld [vmem:[#allocation7 + $0x10] sm:$0xff]  ;;  %v1122_v16 = vld [vmem:[#allocation7 + $0x8] sm:$0xff]  ;;  %s892_s23 = scalar_lea.hbm %s1771_s13, %s1118_s11  ;;  %s894_s14 = sshll.u32 %s521_s1, 4  ;;  %s895_s14 = int_to_ptr.vmem [resolvable:$true] %s894_s14 }
  0x45   : > { %543 = vadd.xlane.f32.xlu0 %v523_v1  ;;  %v553_v2 = vmul.f32 %v523_v1, %v523_v1  ;;  %v1121_v18 = vld [vmem:[#allocation7] sm:$0xff]  ;;  %v1235_v33 = vld [vmem:[#allocation5] ss:$0 sm:$0xff]  ;;  %v1236_v36 = vld [vmem:[%s1760_s2] ss:$0 sm:$0xff]  ;;  %s896_s3 = sshll.u32 %s892_s23, 4  ;;  %s897_s3 = int_to_ptr.hbm [resolvable:$true] %s896_s3 }
  0x46   : > { %v1237_v40 = vld [vmem:[%s1762_s4] ss:$0 sm:$0xff]  ;;  %v1136_v46 = vld [vmem:[#allocation8 + $0x38] sm:$0xff]  ;;  %v1134_v48 = vld [vmem:[#allocation8 + $0x28] sm:$0xff]  ;;  %s882_s15 = scalar_lea.sflag [#allocation4], %s1673_s19  ;;  %s1416_s18 = sshra.s32 %s897_s3, 4  ;;  %s1417_s18 = int_to_ptr.hbm [resolvable:$true] %s1416_s18 }
  0x47   : > { %749 = vmatpush.bf16.msra.mxu1 %v1136_v46  ;;  %v1135_v47 = vld [vmem:[#allocation8 + $0x30] sm:$0xff]  ;;  %v1133_v49 = vld [vmem:[#allocation8 + $0x20] sm:$0xff]  ;;  %v1132_v50 = vld [vmem:[#allocation8 + $0x18] sm:$0xff]  ;;  %s1418_s21 = scalar_lea.hbm %s1417_s18, 4  ;;  %s1422_s30 = scalar_lea.hbm %s1771_s13, 8 }
  0x48   : > { %634 = vmatpush.bf16.msra.mxu0 %v1127_v5  ;;  %v1131_v51 = vld [vmem:[#allocation8 + $0x10] sm:$0xff]  ;;  %v1130_v53 = vld [vmem:[#allocation8 + $0x8] sm:$0xff]  ;;  %v1129_v54 = vld [vmem:[#allocation8] sm:$0xff]  ;;  %p1419_p1 = scmp.ne.s32.totalorder %s1417_s18, %s1418_s21  ;;  %p1423_p12 = scmp.lt.s32.totalorder %s1417_s18, %s1771_s13 }
  0x49   : > { %v1245_v6 = vpop.eup %1244  ;;  %v1238_v5 = vld [vmem:[%s1763_s5] ss:$0 sm:$0xff]  ;;  %p1424_p7 = scmp.lt.s32.totalorder %s1422_s30, %s1418_s21 }
  0x4a   : > { %v546_v7 = vmul.f32 128.0, %v1245_v6  ;;  %vm550_vm0 = vweird.f32 %v1245_v6  ;;  %p1420_p3 = pnand %p1419_p1, %p1642_p5 }
  0x4b   : > { %750 = vmatpush.bf16.msra.mxu1 %v1135_v47  ;;  %p1425_p8 = por %p1424_p7, %p1423_p12 }
  0x4c   : > { %635 = vmatpush.bf16.msra.mxu0 %v1126_v8  ;;  %v547_v9 = vsub.f32 1.0, %v546_v7  ;;  %v1239_v8 = vld [vmem:[%s1764_s6] ss:$0 sm:$0xff]  ;;  %p1421_p4 = pneg %p1420_p3 }
  0x4d   : > { %554 = vadd.xlane.f32.xlu0 %v553_v2 }
  0x4e   : > { %v548_v11 = vmul.f32 %v1245_v6, %v547_v9  ;;  %p1426_p9 = pnand %p1425_p8, %p1421_p4 }
  0x4f   : > { %751 = vmatpush.bf16.msra.mxu1 %v1134_v48  ;;  %v1243_v48 = vld [vmem:[%s1770_s12] ss:$0 sm:$0xff] }
  0x50   : > { %636 = vmatpush.bf16.msra.mxu0 %v1125_v10  ;;  %v549_v13 = vadd.f32 %v1245_v6, %v548_v11 }
  0x52   : > { %v1691_v17 = vsel %vm550_vm0, %v1245_v6, %v549_v13 }
  0x53   : > { %752 = vmatpush.bf16.msra.mxu1 %v1133_v49 }
  0x54   : > { %637 = vmatpush.bf16.msra.mxu0 %v1124_v12  ;;  %v1240_v12 = vld [vmem:[%s1766_s8] ss:$0 sm:$0xff] }
  0x57   : > { %753 = vmatpush.bf16.msra.mxu1 %v1132_v50 }
  0x58   : > { %638 = vmatpush.bf16.msra.mxu0 %v1123_v14 }
  0x5b   : > { %754 = vmatpush.bf16.msra.mxu1 %v1131_v51 }
  0x5c   : > { %639 = vmatpush.bf16.msra.mxu0 %v1122_v16 }
  0x5f   : > { %755 = vmatpush.bf16.msra.mxu1 %v1130_v53 }
  0x60   : > { %640 = vmatpush.bf16.msra.mxu0 %v1121_v18 }
  0x63   : > { %756 = vmatpush.bf16.msra.mxu1 %v1129_v54 }
  0xb8   : > { %v544_v15 = vpop.xlane.xlu0 %543 }
  0xb9   : > { %v552_v19 = vmul.f32 %v1691_v17, %v544_v15 }
  0xbb   : > { %v557_v21 = vmul.f32 %v552_v19, %v552_v19  ;;  %v560_v32 = vsub.f32 %v523_v1, %v552_v19  ;;  %v1144_v19 = vld [vmem:[#allocation10 + $0x38] sm:$0xff] }
  0xbc   : > { %865 = vmatpush.bf16.msra.mxu2 %v1144_v19 }
  0xc0   : > { %v555_v20 = vpop.xlane.xlu0 %554 }
  0xc1   : > { %v556_v22 = vmul.f32 %v555_v20, %v1691_v17  ;;  %v1143_v20 = vld [vmem:[#allocation10 + $0x30] sm:$0xff] }
  0xc2   : > { %866 = vmatpush.bf16.msra.mxu2 %v1143_v20 }
  0xc3   : > { %v558_v23 = vsub.f32 %v556_v22, %v557_v21  ;;  %v1142_v21 = vld [vmem:[#allocation10 + $0x28] sm:$0xff]  ;;  %v1141_v22 = vld [vmem:[#allocation10 + $0x20] sm:$0xff] }
  0xc5   : > { %v559_v24 = vmax.f32 %v558_v23, 0.0  ;;  %v1140_v23 = vld [vmem:[#allocation10 + $0x18] sm:$0xff] }
  0xc6   : > { %867 = vmatpush.bf16.msra.mxu2 %v1142_v21 }
  0xc7   : > { %v561_v25 = vadd.f32 1e-05, %v559_v24  ;;  %v1139_v24 = vld [vmem:[#allocation10 + $0x10] sm:$0xff] }
  0xc9   : > { %1246 = vrsqrt.f32 %v561_v25  ;;  %vm568_vm2 = vweird.f32 %v561_v25 }
  0xca   : > { %868 = vmatpush.bf16.msra.mxu2 %v1141_v22 }
  0xce   : > { %869 = vmatpush.bf16.msra.mxu2 %v1140_v23 }
  0xcf   : > { %v1247_v26 = vpop.eup %1246 }
  0xd0   : > { %v563_v27 = vmul.f32 %v1247_v26, %v561_v25  ;;  %vm569_vm1 = vweird.f32 %v1247_v26 }
  0xd1   : > { %vm570_vm3 = vmor %vm568_vm2, %vm569_vm1 }
  0xd2   : > { %v564_v28 = vmul.f32 %v1247_v26, %v563_v27  ;;  %870 = vmatpush.bf16.msra.mxu2 %v1139_v24  ;;  %v1137_v27 = vld [vmem:[#allocation10] sm:$0xff] }
  0xd4   : > { %v565_v29 = vmul.f32 0.5, %v564_v28 }
  0xd6   : > { %v566_v30 = vsub.f32 1.5, %v565_v29 }
  0xd8   : > { %v567_v31 = vmul.f32 %v1247_v26, %v566_v30 }
  0xda   : > { %v571_v34 = vsel %vm570_vm3, %v1247_v26, %v567_v31  ;;  %v1138_v26 = vld [vmem:[#allocation10 + $0x8] sm:$0xff] }
  0xdb   : > { %v572_v35 = vmul.f32 %v571_v34, %v560_v32  ;;  %871 = vmatpush.bf16.msra.mxu2 %v1138_v26 }
  0xdd   : > { %v576_v37 = vmul.f32 %v1235_v33, %v572_v35 }
  0xdf   : > { %v580_v38 = vadd.f32 %v1236_v36, %v576_v37  ;;  %872 = vmatpush.bf16.msra.mxu2 %v1137_v27 }
  0xe1   : > { %v581_v39 = vpack.c.bf16 %v580_v38, %v580_v38 }
  0xe3   : > { %641 = vmatmul.bf16.vlgmr.msra.gmra.mxu0 %v581_v39 }
 0x160   : > { %v642_v41 = vpop.f32.mrf.mxu0 }
 0x161   : > { %v643_v42 = vadd.f32 %v1237_v40, %v642_v41 }
 0x163   : > { %v646_v43 = vadd.f32 %v643_v42, %v580_v38 }
 0x165   : > { %666 = vadd.xlane.f32.xlu1 %v646_v43  ;;  %v669_v45 = vmul.f32 %v646_v43, %v646_v43 }
 0x168   : > { %v644_v44 = vpop.f32.mrf.mxu0 }
 0x169   : > { %v1242_v44 = vld [vmem:[%s1768_s10] ss:$0 sm:$0xff] }
 0x16d   : > { %670 = vadd.xlane.f32.xlu1 %v669_v45 }
 0x1d8   : > { %v667_v52 = vpop.xlane.xlu1 %666 }
 0x1d9   : > { %v668_v55 = vmul.f32 %v667_v52, %v1691_v17 }
 0x1db   : > { %v673_v57 = vmul.f32 %v668_v55, %v668_v55  ;;  %v676_v4 = vsub.f32 %v646_v43, %v668_v55 }
 0x1e0   : > { %v671_v56 = vpop.xlane.xlu1 %670 }
 0x1e1   : > { %v672_v58 = vmul.f32 %v671_v56, %v1691_v17 }
 0x1e3   : > { %v674_v59 = vsub.f32 %v672_v58, %v673_v57 }
 0x1e5   : > { %v675_v60 = vmax.f32 %v674_v59, 0.0 }
 0x1e7   : > { %v677_v61 = vadd.f32 1e-05, %v675_v60 }
 0x1e9   : > { %1248 = vrsqrt.f32 %v677_v61  ;;  %vm684_vm5 = vweird.f32 %v677_v61 }
 0x1ef   : > { %v1249_v62 = vpop.eup %1248 }
 0x1f0   : > { %v679_v63 = vmul.f32 %v1249_v62, %v677_v61  ;;  %vm685_vm4 = vweird.f32 %v1249_v62 }
 0x1f1   : > { %vm686_vm6 = vmor %vm684_vm5, %vm685_vm4 }
 0x1f2   : > { %v680_v0 = vmul.f32 %v1249_v62, %v679_v63 }
 0x1f4   : > { %v681_v1 = vmul.f32 0.5, %v680_v0 }
 0x1f6   : > { %v682_v2 = vsub.f32 1.5, %v681_v1 }
 0x1f8   : > { %v683_v3 = vmul.f32 %v1249_v62, %v682_v2 }
 0x1fa   : > { %v687_v6 = vsel %vm686_vm6, %v1249_v62, %v683_v3 }
 0x1fb   : > { %v688_v7 = vmul.f32 %v687_v6, %v676_v4 }
 0x1fd   : > { %v692_v9 = vmul.f32 %v1238_v5, %v688_v7 }
 0x1ff   : > { %v696_v10 = vadd.f32 %v1239_v8, %v692_v9 }
 0x201   : > { %v697_v11 = vpack.c.bf16 %v696_v10, %v696_v10 }
 0x203   : > { %757 = vmatmul.bf16.vlgmr.msra.gmra.mxu1 %v697_v11 }
 0x280   : > { %v758_v13 = vpop.f32.mrf.mxu1 }
 0x281   : > { %v759_v14 = vadd.f32 %v1240_v12, %v758_v13 }
 0x283   : > { %v762_v15 = vadd.f32 %v759_v14, %v696_v10 }
 0x285   : > { %782 = vadd.xlane.f32.xlu2 %v762_v15  ;;  %v785_v18 = vmul.f32 %v762_v15, %v762_v15 }
 0x288   : > { %v760_v16 = vpop.f32.mrf.mxu1 }
 0x28d   : > { %786 = vadd.xlane.f32.xlu2 %v785_v18 }
 0x2f8   : > { %v783_v25 = vpop.xlane.xlu2 %782 }
 0x2f9   : > { %v784_v28 = vmul.f32 %v783_v25, %v1691_v17 }
 0x2fb   : > { %v789_v30 = vmul.f32 %v784_v28, %v784_v28  ;;  %v792_v41 = vsub.f32 %v762_v15, %v784_v28 }
 0x300   : > { %v787_v29 = vpop.xlane.xlu2 %786 }
 0x301   : > { %v788_v31 = vmul.f32 %v787_v29, %v1691_v17  ;;  %v1241_v17 = vld [vmem:[%s1767_s9] ss:$0 sm:$0xff] }
 0x303   : > { %v790_v32 = vsub.f32 %v788_v31, %v789_v30 }
 0x305   : > { %v791_v33 = vmax.f32 %v790_v32, 0.0 }
 0x307   : > { %v793_v34 = vadd.f32 1e-05, %v791_v33 }
 0x309   : > { %1250 = vrsqrt.f32 %v793_v34  ;;  %vm800_vm8 = vweird.f32 %v793_v34 }
 0x30f   : > { %v1251_v35 = vpop.eup %1250 }
 0x310   : > { %v795_v36 = vmul.f32 %v1251_v35, %v793_v34  ;;  %vm801_vm7 = vweird.f32 %v1251_v35 }
 0x311   : > { %vm802_vm9 = vmor %vm800_vm8, %vm801_vm7 }
 0x312   : > { %v796_v37 = vmul.f32 %v1251_v35, %v795_v36 }
 0x314   : > { %v797_v38 = vmul.f32 0.5, %v796_v37 }
 0x316   : > { %v798_v39 = vsub.f32 1.5, %v797_v38 }
 0x318   : > { %v799_v40 = vmul.f32 %v1251_v35, %v798_v39 }
 0x31a   : > { %v803_v42 = vsel %vm802_vm9, %v1251_v35, %v799_v40 }
 0x31b   : > { %v804_v43 = vmul.f32 %v803_v42, %v792_v41 }
 0x31d   : > { %v808_v45 = vmul.f32 %v1241_v17, %v804_v43 }
 0x31f   : > { %v812_v46 = vadd.f32 %v1242_v44, %v808_v45 }
 0x321   : > { %v813_v47 = vpack.c.bf16 %v812_v46, %v812_v46 }
 0x323   : > { %873 = vmatmul.bf16.vlgmr.msra.gmra.mxu2 %v813_v47 }
 0x3a6   : > { %v874_v49 = vpop.f32.mrf.mxu2 }
 0x3a7   : > { %v875_v50 = vadd.f32 %v1243_v48, %v874_v49 }
 0x3a9   : > { %v878_v51 = vadd.f32 %v875_v50, %v812_v46 }
 0x3ab   : > { %v879_v52 = vpack.c.bf16 %v878_v51, %v878_v51 }
 0x3ad   : > { %880 = vst [vmem:[%s521_s1] sm:$0xf] %v879_v52 }
 0x3ae   : > { %v876_v53 = vpop.f32.mrf.mxu2 }
 0x3af   : > { %1429 = shalt.err (!%p1426_p9)
}
 0x3b0   : > { %1163 = dma.vmem_to_hbm [thread:$0]  (%p1642_p5), %s895_s14, 64, %s897_s3, %s882_s15  }
 0x3b1 PF: > { %s908_s27 = sand.u32 1, %s1464_s25   ;;  %p1796_p10 = scmp.ge.s32.totalorder %s1476_s28, 2 }
 0x3b2   : > { %s909_s16 = scalar_lea.sflag [#allocation4], %s908_s27 }
 0x3b3   : > { %p1183_p13 = pnand %p1796_p10, %p1646_p6 }
 0x3b5   : > { %p1184_p11 = pneg %p1183_p13 }
 0x3b7   : > { %1459 = dma.done.wait (%p1184_p11), %s909_s16, 64  }
 0x3b8   : > { %1461 = vsyncadd (%p1184_p11), %s909_s16, 4294967232  ;;  %s1797_s28 = sld [smem:[#allocation17_spill]]  ;;  %s1800_s25 = smov %s1468_s26 }
 0x3b9   : > { %s1798_s29 = sld [smem:[#allocation16_spill]] }
 0x3ba   : > { %s1799_s27 = sld [smem:[#allocation18_spill]] }
 0x3be   : > { %p28_p0 = scmp.ge.s32.totalorder %s1797_s28, 4  }
 0x3bf   : > { %s1801_s26 = smov %s1798_s29 }
 0x3c0   :  { %30 = sbr.rel (!%p28_p0) target bundleno = 12 (0xc), region = 133 }
 0x3c5   :  { %915 = vsyncpa [#allocation3], 1 }
 0x3c6   :  { %917 = vsyncpa [#allocation3 + $0x1], 1 }
 0x3c7   :  { %918 = vsyncpa [#allocation6], 1 }
 0x3c8   :  { %919 = vsyncpa [#allocation9], 1 }
 0x3c9   :  { %920 = vsyncpa [#allocation4], 1 }
 0x3ca   :  { %922 = vsyncpa [#allocation4 + $0x1], 1 }

</bundles_post_ra>
